<compile_context>
chip_gen: v5e
topology: v5e:2x2
jax: 0.10.0
libtpu: 0.0.40
codegen_flags: <defaults>
</compile_context>

<pallas_src>
import functools

import jax
import jax.numpy as jnp
from jax.experimental import pallas as pl
from jax.experimental.pallas import tpu as pltpu

MIX = 5                 # mixture_dim
H1, H2 = 64, 32         # MLP hidden sizes (from the nn.Sequential)
Y_OUT = 3 * MIX         # 15 MLP outputs: (weights | loc | log_scale)
Y_PAD = 16              # padded to a multiple of 8 sublanes
DEFAULT_TILE_B = 4096   # rows per grid step (lane-dense, small VMEM footprint)
LOG_SQRT_2PI = 0.9189385332046727  # 0.5 * log(2*pi)


def arf2d_kernel(x_ref, mw_ref, loc1_ref, ls1_ref,
                 w1_ref, b1_ref, w2_ref, b2_ref, w3_ref, b3_ref,
                 out_ref, *, batch, tile_b):
    """One batch tile, feature-major: the batch dim is the 128-wide lane axis.

    Writes per-element log(m1) + log(m2) (masked past the true batch size) to a
    lane-dense (1, tile_b) output block; the wrapper finishes the reduction.
    """
    x = x_ref[...]                       # (2, tile_b) f32
    x1 = x[0:1, :]                       # (1, tile_b)
    x2 = x[1:2, :]

    # ---- flow1: log mixture-of-Gaussians density at x1 ----------------------
    mw = mw_ref[...]                     # (MIX, 1) mixture logits
    ls1 = ls1_ref[...]                   # (MIX, 1) log_scale
    mx1 = jnp.max(mw, axis=0, keepdims=True)                                # (1, 1)
    log_den1 = jnp.log(jnp.sum(jnp.exp(mw - mx1), axis=0, keepdims=True))   # (1, 1)
    inv_s1 = jnp.exp(-ls1)               # (MIX, 1) -- no divides anywhere
    z1 = (x1 - loc1_ref[...]) * inv_s1                                      # (MIX, tile_b)
    # softmax-weight * pdf fused into one exp: exp(logit - max - ls - z^2/2)
    t1 = (mw - mx1 - ls1) - 0.5 * z1 * z1                                   # (MIX, tile_b)
    num1 = jnp.sum(jnp.exp(t1), axis=0, keepdims=True)                      # (1, tile_b)
    log_m1 = jnp.log(num1) - log_den1 - LOG_SQRT_2PI                        # (1, tile_b)
    # NOTE: the Normal.cdf latent path (z1/z2 of get_outputs) is unused by
    # forward()'s loss and is omitted.

    # ---- conditional MLP on x1, feature-major (batch stays on lanes) --------
    h1 = jnp.maximum(w1_ref[...] * x1 + b1_ref[...], 0.0)       # (H1, tile_b) outer product
    h2 = jnp.maximum(
        jnp.dot(w2_ref[...], h1, preferred_element_type=jnp.float32) + b2_ref[...],
        0.0)                                                    # (H2, tile_b)
    y = jnp.dot(w3_ref[...], h2, preferred_element_type=jnp.float32) + b3_ref[...]  # (Y_PAD, tile_b)

    lg = y[0:MIX, :]                     # (MIX, tile_b) mixture logits
    lc = y[MIX:2 * MIX, :]               # (MIX, tile_b) loc
    lsc = y[2 * MIX:3 * MIX, :]          # (MIX, tile_b) log_scale

    inv_s2 = jnp.exp(-lsc)
    z2 = (x2 - lc) * inv_s2                                                 # (MIX, tile_b)
    mx2 = jnp.max(lg, axis=0, keepdims=True)                                # (1, tile_b)
    num2 = jnp.sum(jnp.exp(lg - mx2 - lsc - 0.5 * z2 * z2), axis=0, keepdims=True)
    den2 = jnp.sum(jnp.exp(lg - mx2), axis=0, keepdims=True)
    log_m2 = jnp.log(num2) - jnp.log(den2) - LOG_SQRT_2PI                   # (1, tile_b)

    # ---- per-element contribution, masked past the true batch ---------------
    idx = (pl.program_id(0) * tile_b
           + jax.lax.broadcasted_iota(jnp.int32, (1, tile_b), 1))
    out_ref[...] = jnp.where(idx < batch, log_m1 + log_m2, 0.0)


def autoregressive_flow_2d_loss(x, params, *, tile_b=None):
    """Forward pass of AutoregressiveNormalizingFlow2D -> scalar NLL loss."""
    batch = x.shape[0]
    if tile_b is None:
        tile_b = min(DEFAULT_TILE_B, ((batch + 127) // 128) * 128)
    assert tile_b % 128 == 0, "tile_b must be a multiple of 128 lanes"
    num_blocks = pl.cdiv(batch, tile_b)
    padded_b = num_blocks * tile_b

    # Layout plumbing (outside the kernel): batch-major -> feature-major so the
    # batch dimension lands on the 128-wide lane axis inside the kernel.
    xt = jnp.zeros((2, padded_b), jnp.float32)
    xt = xt.at[:, :batch].set(x.astype(jnp.float32).T)

    mw = params["mixture_weights"].reshape(MIX, 1)
    loc1 = params["loc"].reshape(MIX, 1)
    ls1 = params["log_scale"].reshape(MIX, 1)
    w1 = params["w1"].reshape(H1, 1)            # Linear(1, 64) weight, column vector
    b1 = params["b1"].reshape(H1, 1)
    w2 = params["w2"].T                         # (H2, H1)
    b2 = params["b2"].reshape(H2, 1)
    w3 = jnp.zeros((Y_PAD, H2), jnp.float32).at[:Y_OUT, :].set(params["w3"].T)
    b3 = jnp.zeros((Y_PAD, 1), jnp.float32).at[:Y_OUT, :].set(
        params["b3"].reshape(Y_OUT, 1))

    def resident(shape):                         # full-array block, stays in VMEM
        return pl.BlockSpec(shape, lambda i: (0, 0))

    param_bytes = 4 * (3 * MIX + 2 * H1 + H2 * H1 + H2 + Y_PAD * H2 + Y_PAD)
    cost = pl.CostEstimate(
        flops=padded_b * (2 * H1 + 2 * H1 * H2 + 2 * H2 * Y_PAD + 12 * MIX),
        transcendentals=padded_b * (4 * MIX + 3),
        bytes_accessed=12 * padded_b + param_bytes)

    per_elem = pl.pallas_call(
        functools.partial(arf2d_kernel, batch=batch, tile_b=tile_b),
        out_shape=jax.ShapeDtypeStruct((1, padded_b), jnp.float32),
        grid=(num_blocks,),
        in_specs=[
            pl.BlockSpec((2, tile_b), lambda i: (0, i)),      # x tile (lane-dense)
            resident((MIX, 1)), resident((MIX, 1)), resident((MIX, 1)),
            resident((H1, 1)), resident((H1, 1)),
            resident((H2, H1)), resident((H2, 1)),
            resident((Y_PAD, H2)), resident((Y_PAD, 1)),
        ],
        out_specs=pl.BlockSpec((1, tile_b), lambda i: (0, i)),
        compiler_params=pltpu.CompilerParams(
            dimension_semantics=("parallel",),
            vmem_limit_bytes=32 * 1024 * 1024),
        cost_estimate=cost,
    )(xt, mw, loc1, ls1, w1, b1, w2, b2, w3, b3)

    # Trivial final reduction; padded lanes were masked to 0 inside the kernel.
    return -jnp.sum(per_elem) / (2.0 * batch)


def init_params(key):
    """Deterministic parameter init matching the torch module's shapes/init style."""
    k = jax.random.split(key, 8)

    def linear_init(kk, fan_in, fan_out):
        kw, kb = jax.random.split(kk)
        bound = 1.0 / jnp.sqrt(jnp.float32(fan_in))
        w = jax.random.uniform(kw, (fan_in, fan_out), jnp.float32, -bound, bound)
        b = jax.random.uniform(kb, (1, fan_out), jnp.float32, -bound, bound)
        return w, b

    w1, b1 = linear_init(k[2], 1, H1)
    w2, b2 = linear_init(k[3], H1, H2)
    w3, b3 = linear_init(k[4], H2, Y_OUT)
    return {
        # flow1: mixture_weights = ones; loc, log_scale ~ U[0, 1) (torch init.uniform)
        "mixture_weights": jnp.ones((1, MIX), jnp.float32),
        "loc": jax.random.uniform(k[0], (1, MIX), jnp.float32),
        "log_scale": jax.random.uniform(k[1], (1, MIX), jnp.float32),
        "w1": w1, "b1": b1,
        "w2": w2, "b2": b2,
        "w3": w3, "b3": b3,
    }


def reference_loss(x, p):
    """Pure-JAX reference of the torch forward(), for correctness checking."""
    x = x.astype(jnp.float32)
    x1, x2 = x[:, 0:1], x[:, 1:2]
    inv_sqrt_2pi = 1.0 / jnp.sqrt(2.0 * jnp.pi)

    wm = jax.nn.softmax(p["mixture_weights"], axis=1)
    s1 = jnp.exp(p["log_scale"])
    z1 = (x1 - p["loc"]) / s1
    m1 = jnp.sum(jnp.exp(-0.5 * z1 * z1) * inv_sqrt_2pi / s1 * wm, axis=1)

    h1 = jax.nn.relu(x1 @ p["w1"] + p["b1"])
    h2 = jax.nn.relu(h1 @ p["w2"] + p["b2"])
    y = h2 @ p["w3"] + p["b3"]
    w2m = jax.nn.softmax(y[:, 0:MIX], axis=1)
    loc2 = y[:, MIX:2 * MIX]
    s2 = jnp.exp(y[:, 2 * MIX:3 * MIX])
    z2 = (x2 - loc2) / s2
    m2 = jnp.sum(jnp.exp(-0.5 * z2 * z2) * inv_sqrt_2pi / s2 * w2m, axis=1)

    probs = jnp.stack([m1, m2], axis=1)
    return -jnp.mean(jnp.log(probs))


if __name__ == "__main__":
    key = jax.random.PRNGKey(0)
    k_params, k_x1, k_x2 = jax.random.split(key, 3)
    params = init_params(k_params)

    # Small demo batch (single 128-lane tile, pad lanes masked inside the kernel).
    x_small = jax.random.normal(k_x1, (8, 2), jnp.float32)
    loss = jax.block_until_ready(jax.jit(autoregressive_flow_2d_loss)(x_small, params))
    ref = jax.block_until_ready(reference_loss(x_small, params))
    assert jnp.allclose(loss, ref, rtol=1e-3, atol=1e-3), (loss, ref)

    # Multi-block grid with a ragged last tile (exercises pipelining + masking).
    x_big = jax.random.normal(k_x2, (300, 2), jnp.float32)
    loss_fn = jax.jit(functools.partial(autoregressive_flow_2d_loss, tile_b=128))
    loss_big = jax.block_until_ready(loss_fn(x_big, params))
    ref_big = jax.block_until_ready(reference_loss(x_big, params))
    assert jnp.allclose(loss_big, ref_big, rtol=1e-3, atol=1e-3), (loss_big, ref_big)

    print("KERNEL_OK")
</pallas_src>

<mosaic_0001>
module attributes {stable_mosaic.version = 11 : i64} {
  func.func @arf2d_kernel(%arg0: i32, %arg1: memref<2x128xf32, #tpu.memory_space<vmem>>, %arg2: memref<5x1xf32, #tpu.memory_space<vmem>>, %arg3: memref<5x1xf32, #tpu.memory_space<vmem>>, %arg4: memref<5x1xf32, #tpu.memory_space<vmem>>, %arg5: memref<64x1xf32, #tpu.memory_space<vmem>>, %arg6: memref<64x1xf32, #tpu.memory_space<vmem>>, %arg7: memref<32x64xf32, #tpu.memory_space<vmem>>, %arg8: memref<32x1xf32, #tpu.memory_space<vmem>>, %arg9: memref<16x32xf32, #tpu.memory_space<vmem>>, %arg10: memref<16x1xf32, #tpu.memory_space<vmem>>, %arg11: memref<1x128xf32, #tpu.memory_space<vmem>>) attributes {dimension_semantics = [#tpu.dimension_semantics<parallel>], iteration_bounds = array<i64: 1>, scalar_prefetch = 0 : i64, scratch_operands = 0 : i64, tpu.core_type = #tpu.core_type<tc>, window_params = [{transform_indices = @transform_0, window_bounds = array<i64: 2, 128>}, {pipeline_mode = #tpu.pipeline_mode<synchronous>, transform_indices = @transform_1, window_bounds = array<i64: 5, 1>}, {pipeline_mode = #tpu.pipeline_mode<synchronous>, transform_indices = @transform_2, window_bounds = array<i64: 5, 1>}, {pipeline_mode = #tpu.pipeline_mode<synchronous>, transform_indices = @transform_3, window_bounds = array<i64: 5, 1>}, {pipeline_mode = #tpu.pipeline_mode<synchronous>, transform_indices = @transform_4, window_bounds = array<i64: 64, 1>}, {pipeline_mode = #tpu.pipeline_mode<synchronous>, transform_indices = @transform_5, window_bounds = array<i64: 64, 1>}, {pipeline_mode = #tpu.pipeline_mode<synchronous>, transform_indices = @transform_6, window_bounds = array<i64: 32, 64>}, {pipeline_mode = #tpu.pipeline_mode<synchronous>, transform_indices = @transform_7, window_bounds = array<i64: 32, 1>}, {pipeline_mode = #tpu.pipeline_mode<synchronous>, transform_indices = @transform_8, window_bounds = array<i64: 16, 32>}, {pipeline_mode = #tpu.pipeline_mode<synchronous>, transform_indices = @transform_9, window_bounds = array<i64: 16, 1>}, {transform_indices = @transform_10, window_bounds = array<i64: 1, 128>}]} {
    %c0 = arith.constant 0 : index
    %c0_0 = arith.constant 0 : index
    %0 = vector.load %arg1[%c0, %c0_0] : memref<2x128xf32, #tpu.memory_space<vmem>>, vector<2x128xf32>
    %1 = vector.extract_strided_slice %0 {offsets = [0, 0], sizes = [1, 128], strides = [1, 1]} : vector<2x128xf32> to vector<1x128xf32>
    %2 = vector.extract_strided_slice %0 {offsets = [1, 0], sizes = [1, 128], strides = [1, 1]} : vector<2x128xf32> to vector<1x128xf32>
    %c0_1 = arith.constant 0 : index
    %c0_2 = arith.constant 0 : index
    %3 = vector.load %arg2[%c0_1, %c0_2] : memref<5x1xf32, #tpu.memory_space<vmem>>, vector<5x1xf32>
    %c0_3 = arith.constant 0 : index
    %c0_4 = arith.constant 0 : index
    %4 = vector.load %arg4[%c0_3, %c0_4] : memref<5x1xf32, #tpu.memory_space<vmem>>, vector<5x1xf32>
    %cst = arith.constant dense<0xFF800000> : vector<1xf32>
    %5 = vector.multi_reduction <maximumf>, %3, %cst [0] : vector<5x1xf32> to vector<1xf32>
    %6 = vector.shape_cast %5 : vector<1xf32> to vector<1x1xf32>
    %7 = vector.broadcast %6 : vector<1x1xf32> to vector<5x1xf32>
    %8 = arith.subf %3, %7 : vector<5x1xf32>
    %9 = math.exp %8 : vector<5x1xf32>
    %cst_5 = arith.constant dense<0.000000e+00> : vector<1xf32>
    %10 = vector.multi_reduction <add>, %9, %cst_5 [0] : vector<5x1xf32> to vector<1xf32>
    %11 = vector.shape_cast %10 : vector<1xf32> to vector<1x1xf32>
    %12 = math.log %11 : vector<1x1xf32>
    %cst_6 = arith.constant 0.000000e+00 : f32
    %13 = vector.broadcast %cst_6 : f32 to vector<5x1xf32>
    %14 = arith.subf %13, %4 : vector<5x1xf32>
    %15 = math.exp %14 : vector<5x1xf32>
    %c0_7 = arith.constant 0 : index
    %c0_8 = arith.constant 0 : index
    %16 = vector.load %arg3[%c0_7, %c0_8] : memref<5x1xf32, #tpu.memory_space<vmem>>, vector<5x1xf32>
    %17 = vector.broadcast %1 : vector<1x128xf32> to vector<5x128xf32>
    %18 = vector.broadcast %16 : vector<5x1xf32> to vector<5x128xf32>
    %19 = arith.subf %17, %18 : vector<5x128xf32>
    %20 = vector.broadcast %15 : vector<5x1xf32> to vector<5x128xf32>
    %21 = arith.mulf %19, %20 : vector<5x128xf32>
    %22 = vector.broadcast %6 : vector<1x1xf32> to vector<5x1xf32>
    %23 = arith.subf %3, %22 : vector<5x1xf32>
    %24 = arith.subf %23, %4 : vector<5x1xf32>
    %cst_9 = arith.constant 5.000000e-01 : f32
    %25 = vector.broadcast %cst_9 : f32 to vector<5x128xf32>
    %26 = arith.mulf %25, %21 : vector<5x128xf32>
    %27 = arith.mulf %26, %21 : vector<5x128xf32>
    %28 = vector.broadcast %24 : vector<5x1xf32> to vector<5x128xf32>
    %29 = arith.subf %28, %27 : vector<5x128xf32>
    %30 = math.exp %29 : vector<5x128xf32>
    %cst_10 = arith.constant dense<0.000000e+00> : vector<128xf32>
    %31 = vector.multi_reduction <add>, %30, %cst_10 [0] : vector<5x128xf32> to vector<128xf32>
    %32 = vector.shape_cast %31 : vector<128xf32> to vector<1x128xf32>
    %33 = math.log %32 : vector<1x128xf32>
    %34 = vector.broadcast %12 : vector<1x1xf32> to vector<1x128xf32>
    %35 = arith.subf %33, %34 : vector<1x128xf32>
    %cst_11 = arith.constant 0.918938517 : f32
    %36 = vector.broadcast %cst_11 : f32 to vector<1x128xf32>
    %37 = arith.subf %35, %36 : vector<1x128xf32>
    %c0_12 = arith.constant 0 : index
    %c0_13 = arith.constant 0 : index
    %38 = vector.load %arg5[%c0_12, %c0_13] : memref<64x1xf32, #tpu.memory_space<vmem>>, vector<64x1xf32>
    %39 = vector.broadcast %38 : vector<64x1xf32> to vector<64x128xf32>
    %40 = vector.broadcast %1 : vector<1x128xf32> to vector<64x128xf32>
    %41 = arith.mulf %39, %40 : vector<64x128xf32>
    %c0_14 = arith.constant 0 : index
    %c0_15 = arith.constant 0 : index
    %42 = vector.load %arg6[%c0_14, %c0_15] : memref<64x1xf32, #tpu.memory_space<vmem>>, vector<64x1xf32>
    %43 = vector.broadcast %42 : vector<64x1xf32> to vector<64x128xf32>
    %44 = arith.addf %41, %43 : vector<64x128xf32>
    %cst_16 = arith.constant 0.000000e+00 : f32
    %45 = vector.broadcast %cst_16 : f32 to vector<64x128xf32>
    %46 = arith.maximumf %44, %45 : vector<64x128xf32>
    %c0_17 = arith.constant 0 : index
    %c0_18 = arith.constant 0 : index
    %47 = vector.load %arg7[%c0_17, %c0_18] : memref<32x64xf32, #tpu.memory_space<vmem>>, vector<32x64xf32>
    %cst_19 = arith.constant dense<0.000000e+00> : vector<32x128xf32>
    %48 = tpu.matmul %47, %46, %cst_19 {dimension_numbers = #tpu.dot_dimension_numbers<[1], [0], [0], [1], [0, 0, 1, 1], [], []>} : vector<32x64xf32>, vector<64x128xf32>, vector<32x128xf32> -> vector<32x128xf32>
    %c0_20 = arith.constant 0 : index
    %c0_21 = arith.constant 0 : index
    %49 = vector.load %arg8[%c0_20, %c0_21] : memref<32x1xf32, #tpu.memory_space<vmem>>, vector<32x1xf32>
    %50 = vector.broadcast %49 : vector<32x1xf32> to vector<32x128xf32>
    %51 = arith.addf %48, %50 : vector<32x128xf32>
    %cst_22 = arith.constant 0.000000e+00 : f32
    %52 = vector.broadcast %cst_22 : f32 to vector<32x128xf32>
    %53 = arith.maximumf %51, %52 : vector<32x128xf32>
    %c0_23 = arith.constant 0 : index
    %c0_24 = arith.constant 0 : index
    %54 = vector.load %arg9[%c0_23, %c0_24] : memref<16x32xf32, #tpu.memory_space<vmem>>, vector<16x32xf32>
    %cst_25 = arith.constant dense<0.000000e+00> : vector<16x128xf32>
    %55 = tpu.matmul %54, %53, %cst_25 {dimension_numbers = #tpu.dot_dimension_numbers<[1], [0], [0], [1], [0, 0, 1, 1], [], []>} : vector<16x32xf32>, vector<32x128xf32>, vector<16x128xf32> -> vector<16x128xf32>
    %c0_26 = arith.constant 0 : index
    %c0_27 = arith.constant 0 : index
    %56 = vector.load %arg10[%c0_26, %c0_27] : memref<16x1xf32, #tpu.memory_space<vmem>>, vector<16x1xf32>
    %57 = vector.broadcast %56 : vector<16x1xf32> to vector<16x128xf32>
    %58 = arith.addf %55, %57 : vector<16x128xf32>
    %59 = vector.extract_strided_slice %58 {offsets = [0, 0], sizes = [5, 128], strides = [1, 1]} : vector<16x128xf32> to vector<5x128xf32>
    %60 = vector.extract_strided_slice %58 {offsets = [5, 0], sizes = [5, 128], strides = [1, 1]} : vector<16x128xf32> to vector<5x128xf32>
    %61 = vector.extract_strided_slice %58 {offsets = [10, 0], sizes = [5, 128], strides = [1, 1]} : vector<16x128xf32> to vector<5x128xf32>
    %cst_28 = arith.constant 0.000000e+00 : f32
    %62 = vector.broadcast %cst_28 : f32 to vector<5x128xf32>
    %63 = arith.subf %62, %61 : vector<5x128xf32>
    %64 = math.exp %63 : vector<5x128xf32>
    %65 = vector.broadcast %2 : vector<1x128xf32> to vector<5x128xf32>
    %66 = arith.subf %65, %60 : vector<5x128xf32>
    %67 = arith.mulf %66, %64 : vector<5x128xf32>
    %cst_29 = arith.constant dense<0xFF800000> : vector<128xf32>
    %68 = vector.multi_reduction <maximumf>, %59, %cst_29 [0] : vector<5x128xf32> to vector<128xf32>
    %69 = vector.shape_cast %68 : vector<128xf32> to vector<1x128xf32>
    %70 = vector.broadcast %69 : vector<1x128xf32> to vector<5x128xf32>
    %71 = arith.subf %59, %70 : vector<5x128xf32>
    %72 = arith.subf %71, %61 : vector<5x128xf32>
    %cst_30 = arith.constant 5.000000e-01 : f32
    %73 = vector.broadcast %cst_30 : f32 to vector<5x128xf32>
    %74 = arith.mulf %73, %67 : vector<5x128xf32>
    %75 = arith.mulf %74, %67 : vector<5x128xf32>
    %76 = arith.subf %72, %75 : vector<5x128xf32>
    %77 = math.exp %76 : vector<5x128xf32>
    %cst_31 = arith.constant dense<0.000000e+00> : vector<128xf32>
    %78 = vector.multi_reduction <add>, %77, %cst_31 [0] : vector<5x128xf32> to vector<128xf32>
    %79 = vector.shape_cast %78 : vector<128xf32> to vector<1x128xf32>
    %80 = vector.broadcast %69 : vector<1x128xf32> to vector<5x128xf32>
    %81 = arith.subf %59, %80 : vector<5x128xf32>
    %82 = math.exp %81 : vector<5x128xf32>
    %cst_32 = arith.constant dense<0.000000e+00> : vector<128xf32>
    %83 = vector.multi_reduction <add>, %82, %cst_32 [0] : vector<5x128xf32> to vector<128xf32>
    %84 = vector.shape_cast %83 : vector<128xf32> to vector<1x128xf32>
    %85 = math.log %79 : vector<1x128xf32>
    %86 = math.log %84 : vector<1x128xf32>
    %87 = arith.subf %85, %86 : vector<1x128xf32>
    %cst_33 = arith.constant 0.918938517 : f32
    %88 = vector.broadcast %cst_33 : f32 to vector<1x128xf32>
    %89 = arith.subf %87, %88 : vector<1x128xf32>
    %c128_i32 = arith.constant 128 : i32
    %90 = arith.muli %arg0, %c128_i32 : i32
    %91 = tpu.iota {dimensions = array<i32: 1>} : vector<1x128xi32>
    %92 = vector.broadcast %90 : i32 to vector<1x128xi32>
    %93 = arith.addi %92, %91 : vector<1x128xi32>
    %c8_i32 = arith.constant 8 : i32
    %94 = vector.broadcast %c8_i32 : i32 to vector<1x128xi32>
    %95 = arith.cmpi slt, %93, %94 : vector<1x128xi32>
    %96 = arith.addf %37, %89 : vector<1x128xf32>
    %cst_34 = arith.constant 0.000000e+00 : f32
    %97 = vector.broadcast %cst_34 : f32 to vector<1x128xf32>
    %98 = arith.select %95, %96, %97 : vector<1x128xi1>, vector<1x128xf32>
    %c0_35 = arith.constant 0 : index
    %c0_36 = arith.constant 0 : index
    %99 = vector.load %arg11[%c0_35, %c0_36] : memref<1x128xf32, #tpu.memory_space<vmem>>, vector<1x128xf32>
    tpu.vector_store %arg11[%c0_35, %c0_36], %98 {strides = array<i32>} : memref<1x128xf32, #tpu.memory_space<vmem>>, vector<1x128xf32>,
    return
  }
  func.func @transform_0(%arg0: i32) -> (i32, i32) {
    %c0_i32 = arith.constant 0 : i32
    %c0_i32_0 = arith.constant 0 : i32
    return %c0_i32, %arg0 : i32, i32
  }
  func.func @transform_1(%arg0: i32) -> (i32, i32) {
    %c0_i32 = arith.constant 0 : i32
    %c0_i32_0 = arith.constant 0 : i32
    %c0_i32_1 = arith.constant 0 : i32
    return %c0_i32, %c0_i32_0 : i32, i32
  }
  func.func @transform_2(%arg0: i32) -> (i32, i32) {
    %c0_i32 = arith.constant 0 : i32
    %c0_i32_0 = arith.constant 0 : i32
    %c0_i32_1 = arith.constant 0 : i32
    return %c0_i32, %c0_i32_0 : i32, i32
  }
  func.func @transform_3(%arg0: i32) -> (i32, i32) {
    %c0_i32 = arith.constant 0 : i32
    %c0_i32_0 = arith.constant 0 : i32
    %c0_i32_1 = arith.constant 0 : i32
    return %c0_i32, %c0_i32_0 : i32, i32
  }
  func.func @transform_4(%arg0: i32) -> (i32, i32) {
    %c0_i32 = arith.constant 0 : i32
    %c0_i32_0 = arith.constant 0 : i32
    %c0_i32_1 = arith.constant 0 : i32
    return %c0_i32, %c0_i32_0 : i32, i32
  }
  func.func @transform_5(%arg0: i32) -> (i32, i32) {
    %c0_i32 = arith.constant 0 : i32
    %c0_i32_0 = arith.constant 0 : i32
    %c0_i32_1 = arith.constant 0 : i32
    return %c0_i32, %c0_i32_0 : i32, i32
  }
  func.func @transform_6(%arg0: i32) -> (i32, i32) {
    %c0_i32 = arith.constant 0 : i32
    %c0_i32_0 = arith.constant 0 : i32
    %c0_i32_1 = arith.constant 0 : i32
    return %c0_i32, %c0_i32_0 : i32, i32
  }
  func.func @transform_7(%arg0: i32) -> (i32, i32) {
    %c0_i32 = arith.constant 0 : i32
    %c0_i32_0 = arith.constant 0 : i32
    %c0_i32_1 = arith.constant 0 : i32
    return %c0_i32, %c0_i32_0 : i32, i32
  }
  func.func @transform_8(%arg0: i32) -> (i32, i32) {
    %c0_i32 = arith.constant 0 : i32
    %c0_i32_0 = arith.constant 0 : i32
    %c0_i32_1 = arith.constant 0 : i32
    return %c0_i32, %c0_i32_0 : i32, i32
  }
  func.func @transform_9(%arg0: i32) -> (i32, i32) {
    %c0_i32 = arith.constant 0 : i32
    %c0_i32_0 = arith.constant 0 : i32
    %c0_i32_1 = arith.constant 0 : i32
    return %c0_i32, %c0_i32_0 : i32, i32
  }
  func.func @transform_10(%arg0: i32) -> (i32, i32) {
    %c0_i32 = arith.constant 0 : i32
    %c0_i32_0 = arith.constant 0 : i32
    return %c0_i32, %arg0 : i32, i32
  }
}

</mosaic_0001>

<bundles_post_ra>
// kernel: autoregressive_flow_2d_loss.1
= control target key start
LH: loop header
LB: loop body
LE: loop exit
PB: predicated region body
PF: predicated region fallthrough
CT: control target
= control target key end

     0   :  { %v461_v0 = vmov 0   ;;  %vm38_vm0 = vcmask 4096   ;;  %vm251_vm1 = vcmask 523264   ;;  %vm311_vm2 = vcmask 261120   ;;  %s637_s5 = inlined_call_operand.vmem [shape: f32[64,1], index: 5, kind: input, shape index: {}]   ;;  %s638_s4 = inlined_call_operand.vmem [shape: f32[64,1], index: 4, kind: input, shape index: {}]   ;;  %s639_s1 = inlined_call_operand.vmem [shape: f32[5,1], index: 1, kind: input, shape index: {}]   ;;  %s640_s7 = inlined_call_operand.vmem [shape: f32[32,1], index: 7, kind: input, shape index: {}]   ;;  %s641_s3 = inlined_call_operand.vmem [shape: f32[5,1], index: 3, kind: input, shape index: {}]   ;;  %s642_s9 = inlined_call_operand.vmem [shape: f32[16,1], index: 9, kind: input, shape index: {}]   ;;  %s643_s2 = inlined_call_operand.vmem [shape: f32[5,1], index: 2, kind: input, shape index: {}]   ;;  %s644_s0 = inlined_call_operand.vmem [shape: f32[2,128], index: 0, kind: input, shape index: {}]   ;;  %s645_s6 = inlined_call_operand.vmem [shape: f32[32,64], index: 6, kind: input, shape index: {}]   ;;  %s646_s8 = inlined_call_operand.vmem [shape: f32[16,32], index: 8, kind: input, shape index: {}]   ;;  %s647_s10 = inlined_call_operand.vmem [shape: f32[1,128], index: 10, kind: output, shape index: {}]  }
   0x1   :  { %440 = vset.pattern.permute.xlu2 %v461_v0  ;;  %439 = vset.pattern.permute.xlu1 %v461_v0  ;;  %v166_v1 = vld [vmem:[%s637_s5 + $0x38] sm:$0xff]  ;;  %v165_v2 = vld [vmem:[%s637_s5 + $0x30] sm:$0xff]  ;;  %v36_v4 = vld [vmem:[%s639_s1] sm:$0x1f]  ;;  %vm86_vm3 = vcmask 1044480   ;;  %vm370_vm4 = vcmask 1042432  }
   0x2   :  { %v110_v3 = vld [vmem:[%s638_s4 + $0x38] sm:$0xff]  ;;  %438 = vset.pattern.permute.xlu0 %v461_v0  ;;  %204 = vperm.xlu1 %439, %v166_v1   ;;  %v108_v5 = vld [vmem:[%s638_s4 + $0x28] sm:$0xff]  ;;  %v39_v6 = vsel %vm38_vm0, %v36_v4, -inf  ;;  %v109_v7 = vld [vmem:[%s638_s4 + $0x30] sm:$0xff] }
   0x3   :  { %199 = vperm.xlu2 %440, %v165_v2   ;;  %148 = vperm.xlu0 %438, %v110_v3   ;;  %v107_v8 = vld [vmem:[%s638_s4 + $0x20] sm:$0xff]  ;;  %v40_v9 = vrot.slane %v39_v6, 4  ;;  %v106_v13 = vld [vmem:[%s638_s4 + $0x18] sm:$0xff]  ;;  %v164_v14 = vld [vmem:[%s637_s5 + $0x28] sm:$0xff] }
   0x4   :  { %v163_v15 = vld [vmem:[%s637_s5 + $0x20] sm:$0xff]  ;;  %v162_v20 = vld [vmem:[%s637_s5 + $0x18] sm:$0xff]  ;;  %v105_v21 = vld [vmem:[%s638_s4 + $0x10] sm:$0xff] }
   0x5   :  { %v41_v10 = vmax.f32 %v39_v6, %v40_v9  ;;  %v104_v22 = vld [vmem:[%s638_s4 + $0x8] sm:$0xff]  ;;  %v103_v24 = vld [vmem:[%s638_s4] sm:$0xff]  ;;  %v161_v26 = vld [vmem:[%s637_s5 + $0x10] sm:$0xff] }
   0x6   :  { %v160_v27 = vld [vmem:[%s637_s5 + $0x8] sm:$0xff]  ;;  %v230_v31 = vld [vmem:[%s640_s7 + $0x18] sm:$0xff]  ;;  %v37_v32 = vld [vmem:[%s641_s3] sm:$0x1f] }
   0x7   :  { %v42_v11 = vrot.slane %v41_v10, 2  ;;  %v159_v33 = vld [vmem:[%s637_s5] sm:$0xff]  ;;  %v229_v34 = vld [vmem:[%s640_s7 + $0x10] sm:$0xff]  ;;  %v58_v36 = vsub.f32 0.0, %v37_v32  ;;  %v228_v40 = vld [vmem:[%s640_s7 + $0x8] sm:$0xff] }
   0x8   :  { %v227_v39 = vld [vmem:[%s640_s7] sm:$0xff]  ;;  %v300_v41 = vld [vmem:[%s642_s9 + $0x8] sm:$0xff] }
   0x9   :  { %v43_v12 = vmax.f32 %v41_v10, %v42_v11  ;;  %v59_v38 = vmul.f32 1.442695, %v58_v36  ;;  %v61_v43 = vld [vmem:[%s643_s2] sm:$0x1f] }
   0xa   :  { %138 = vperm.xlu1 %439, %v108_v5   ;;  %v299_v45 = vld [vmem:[%s642_s9] sm:$0xff] }
   0xb   :  { %143 = vperm.xlu0 %438, %v109_v7   ;;  %133 = vperm.xlu2 %440, %v107_v8   ;;  %v44_v16 = vrot.slane %v43_v12, 1  ;;  %v597_v50 = vld [vmem:[%s644_s0] sm:$0x3] }
   0xc   :  { %v600_v51 = vperm.slane %v597_v50, 0 }
   0xd   :  { %v45_v17 = vmax.f32 %v43_v12, %v44_v16 }
   0xf   :  { %v46_v18 = vsub.f32 %v36_v4, %v45_v17 }
  0x11   :  { %v47_v19 = vmul.f32 1.442695, %v46_v18  ;;  %v75_v48 = vsub.f32 %v46_v18, %v37_v32 }
  0x12   :  { %128 = vperm.xlu1 %439, %v106_v13  }
  0x13   :  { %194 = vperm.xlu0 %438, %v164_v14   ;;  %189 = vperm.xlu2 %440, %v163_v15   ;;  %441 = vpow2.f32 %v47_v19 }
  0x14   :  { %443 = vpow2.f32 %v59_v38 }
  0x19   :  { %v442_v23 = vpop.eup %441 }
  0x1a   :  { %184 = vperm.xlu1 %439, %v162_v20   ;;  %v49_v25 = vsel %vm38_vm0, %v442_v23, 0.0  ;;  %v444_v44 = vpop.eup %443 }
  0x1b   :  { %123 = vperm.xlu0 %438, %v105_v21   ;;  %118 = vperm.xlu2 %440, %v104_v22   ;;  %v50_v28 = vrot.slane %v49_v25, 4 }
  0x1d   :  { %v51_v29 = vadd.f32 %v50_v28, %v49_v25  ;;  %v224_v28 = vld [vmem:[%s645_s6 + $0x8] sm:$0xff] }
  0x1f   :  { %v52_v30 = vrot.slane %v51_v29, 2 }
  0x21   :  { %v53_v35 = vadd.f32 %v52_v30, %v51_v29  ;;  %v225_v29 = vld [vmem:[%s645_s6 + $0x10] sm:$0xff]  ;;  %v226_v30 = vld [vmem:[%s645_s6 + $0x18] sm:$0xff] }
  0x22   :  { %113 = vperm.xlu1 %439, %v103_v24  }
  0x23   :  { %179 = vperm.xlu0 %438, %v161_v26   ;;  %174 = vperm.xlu2 %440, %v160_v27   ;;  %v54_v37 = vrot.slane %v53_v35, 1  ;;  %v223_v27 = vld [vmem:[%s645_s6] sm:$0xff] }
  0x25   :  { %v55_v42 = vadd.f32 %v54_v37, %v53_v35 }
  0x27   :  { %445 = vlog2.f32 %v55_v42 }
  0x2a   :  { %248 = vperm.xlu1 %439, %v230_v31  }
  0x2b   :  { %169 = vperm.xlu0 %438, %v159_v33   ;;  %243 = vperm.xlu2 %440, %v229_v34  }
  0x2d   :  { %v446_v46 = vpop.eup %445 }
  0x2e   :  { %v57_v47 = vmul.f32 0.6931472, %v446_v46 }
  0x32   :  { %233 = vperm.xlu1 %439, %v227_v39  }
  0x33   :  { %238 = vperm.xlu0 %438, %v228_v40   ;;  %308 = vperm.xlu2 %440, %v300_v41  }
  0x3a   :  { %65 = vperm.xlu1 %439, %v61_v43  }
  0x3b   :  { %303 = vperm.xlu0 %438, %v299_v45   ;;  %71 = vperm.xlu2 %440, %v444_v44  }
  0x42   :  { %98 = vperm.xlu1 %439, %v57_v47   ;;  %v297_v47 = vld [vmem:[%s646_s8] sm:$0xff] }
  0x43   :  { %80 = vperm.xlu0 %438, %v75_v48   ;;  %v298_v48 = vld [vmem:[%s646_s8 + $0x8] sm:$0xff] }
  0x5d   :  { %v200_v49 = vpop.permute.xlu2 %199 }
  0x65   :  { %v134_v53 = vpop.permute.xlu2 %133 }
  0x66   :  { %v155_v63 = vmul.f32 %v134_v53, %v600_v51 }
  0x6d   :  { %v190_v61 = vpop.permute.xlu2 %189 }
  0x6e   :  { %v211_v4 = vadd.f32 %v190_v61, %v155_v63 }
  0x70   :  { %v219_v8 = vmax.f32 %v211_v4, 0.0 }
  0x74   :  { %v205_v52 = vpop.permute.xlu1 %204 }
  0x75   :  { %v149_v54 = vpop.permute.xlu0 %148  ;;  %v119_v7 = vpop.permute.xlu2 %118 }
  0x76   :  { %v158_v55 = vmul.f32 %v149_v54, %v600_v51  ;;  %v152_v14 = vmul.f32 %v119_v7, %v600_v51 }
  0x78   :  { %v214_v56 = vadd.f32 %v205_v52, %v158_v55 }
  0x7a   :  { %v222_v57 = vmax.f32 %v214_v56, 0.0 }
  0x7c   :  { %272 = vmatpush.msra.mxu0 %v222_v57  ;;  %421 = vmatpush.msra.mxu2 %v222_v57  ;;  %v139_v58 = vpop.permute.xlu1 %138 }
  0x7d   :  { %422 = vmatpush.msra.mxu3 %v222_v57  ;;  %v144_v59 = vpop.permute.xlu0 %143  ;;  %v156_v1 = vmul.f32 %v139_v58, %v600_v51  ;;  %v175_v15 = vpop.permute.xlu2 %174 }
  0x7e   :  { %v157_v60 = vmul.f32 %v144_v59, %v600_v51  ;;  %v208_v18 = vadd.f32 %v175_v15, %v152_v14 }
  0x80   :  { %v213_v62 = vadd.f32 %v200_v49, %v157_v60  ;;  %v216_v22 = vmax.f32 %v208_v18, 0.0 }
  0x82   :  { %v221_v0 = vmax.f32 %v213_v62, 0.0 }
  0x84   :  { %273 = vmatpush.msra.mxu0 %v221_v0  ;;  %423 = vmatpush.msra.mxu2 %v221_v0  ;;  %v129_v2 = vpop.permute.xlu1 %128 }
  0x85   :  { %424 = vmatpush.msra.mxu3 %v221_v0  ;;  %v195_v3 = vpop.permute.xlu0 %194  ;;  %v154_v9 = vmul.f32 %v129_v2, %v600_v51  ;;  %v244_v33 = vpop.permute.xlu2 %243 }
  0x86   :  { %v212_v5 = vadd.f32 %v195_v3, %v156_v1 }
  0x88   :  { %v220_v6 = vmax.f32 %v212_v5, 0.0 }
  0x8a   :  { %274 = vmatpush.msra.mxu0 %v220_v6  ;;  %425 = vmatpush.msra.mxu2 %v220_v6 }
  0x8b   :  { %426 = vmatpush.msra.mxu3 %v220_v6 }
  0x8c   :  { %275 = vmatpush.msra.mxu0 %v219_v8  ;;  %427 = vmatpush.msra.mxu2 %v219_v8  ;;  %v185_v10 = vpop.permute.xlu1 %184 }
  0x8d   :  { %428 = vmatpush.msra.mxu3 %v219_v8  ;;  %v210_v11 = vadd.f32 %v185_v10, %v154_v9  ;;  %v124_v12 = vpop.permute.xlu0 %123  ;;  %v309_v49 = vpop.permute.xlu2 %308 }
  0x8e   :  { %v153_v16 = vmul.f32 %v124_v12, %v600_v51 }
  0x8f   :  { %v218_v13 = vmax.f32 %v210_v11, 0.0  ;;  %v344_v11 = vperm.slane %v597_v50, 1 }
  0x91   :  { %276 = vmatpush.msra.mxu0 %v218_v13  ;;  %429 = vmatpush.msra.mxu2 %v218_v13 }
  0x92   :  { %430 = vmatpush.msra.mxu3 %v218_v13 }
  0x94   :  { %v114_v21 = vpop.permute.xlu1 %113 }
  0x95   :  { %v180_v17 = vpop.permute.xlu0 %179  ;;  %v151_v23 = vmul.f32 %v114_v21, %v600_v51  ;;  %v72_v54 = vpop.permute.xlu2 %71 }
  0x96   :  { %v209_v19 = vadd.f32 %v180_v17, %v153_v16 }
  0x98   :  { %v217_v20 = vmax.f32 %v209_v19, 0.0 }
  0x9a   :  { %277 = vmatpush.msra.mxu0 %v217_v20  ;;  %431 = vmatpush.msra.mxu2 %v217_v20 }
  0x9b   :  { %432 = vmatpush.msra.mxu3 %v217_v20 }
  0x9c   :  { %278 = vmatpush.msra.mxu0 %v216_v22  ;;  %433 = vmatpush.msra.mxu2 %v216_v22  ;;  %v249_v32 = vpop.permute.xlu1 %248 }
  0x9d   :  { %434 = vmatpush.msra.mxu3 %v216_v22  ;;  %v170_v24 = vpop.permute.xlu0 %169 }
  0x9e   :  { %v207_v25 = vadd.f32 %v170_v24, %v151_v23 }
  0xa0   :  { %v215_v26 = vmax.f32 %v207_v25, 0.0 }
  0xa2   :  { %279 = vmatpush.msra.mxu0 %v215_v26  ;;  %435 = vmatpush.msra.mxu2 %v215_v26 }
  0xa3   :  { %436 = vmatpush.msra.mxu3 %v215_v26  ;;  %414 = vmatmul.msk.f32.vlgmr.msra.gmra.mxu0 %vm251_vm1, %v223_v27 }
  0xa4   :  { %415 = vmatmul.msk.f32.vlgmr.msra.gmra.mxu2 %vm251_vm1, %v224_v28  ;;  %416 = vmatmul.msk.f32.vlgmr.msra.gmra.mxu3 %vm251_vm1, %v225_v29  ;;  %v234_v42 = vpop.permute.xlu1 %233 }
  0xa5   :  { %v239_v38 = vpop.permute.xlu0 %238 }
  0xac   :  { %417 = vmatmul.msk.f32.gmra.mxu3 %vm251_vm1, %v226_v30  ;;  %v66_v52 = vpop.permute.xlu1 %65 }
  0xad   :  { %v68_v53 = vsub.f32 %v600_v51, %v66_v52  ;;  %v304_v55 = vpop.permute.xlu0 %303 }
  0xaf   :  { %v74_v56 = vmul.f32 %v72_v54, %v68_v53 }
  0xb1   :  { %v76_v57 = vmul.f32 0.5, %v74_v56 }
  0xb3   :  { %v77_v60 = vmul.f32 %v76_v57, %v74_v56 }
  0xb5   :  { %v81_v61 = vpop.permute.xlu0 %80 }
  0xb6   :  { %v83_v0 = vsub.f32 %v81_v61, %v77_v60  ;;  %v99_v60 = vpop.permute.xlu1 %98 }
  0xb8   :  { %v84_v5 = vmul.f32 1.442695, %v83_v0 }
  0xba   :  { %447 = vpow2.f32 %v84_v5 }
  0xc0   :  { %v448_v13 = vpop.eup %447 }
  0xc1   :  { %v87_v18 = vsel %vm86_vm3, %v448_v13, 0.0 }
  0xc2   :  { %v88_v24 = vrot.slane %v87_v18, 4 }
  0xc4   :  { %v89_v30 = vadd.f32 %v88_v24, %v87_v18 }
 0x120   :  { %v281_v39 = vpop.f32.mrf.mxu0 }
 0x121   :  { %v282_v43 = vadd.f32 %v281_v39, %v234_v42 }
 0x123   :  { %v293_v46 = vmax.f32 %v282_v43, 0.0 }
 0x127   :  { %v287_v31 = vpop.f32.mrf.mxu3  ;;  %v284_v34 = vpop.f32.mrf.mxu2 }
 0x128   :  { %v288_v36 = vadd.f32 %v287_v31, %v244_v33  ;;  %v285_v40 = vadd.f32 %v284_v34, %v239_v38 }
 0x12a   :  { %v295_v44 = vmax.f32 %v288_v36, 0.0  ;;  %v294_v45 = vmax.f32 %v285_v40, 0.0 }
 0x12f   :  { %v290_v35 = vpop.f32.mrf.mxu3 }
 0x130   :  { %v291_v37 = vadd.f32 %v290_v35, %v249_v32  ;;  %v90_v35 = vrot.slane %v89_v30, 2 }
 0x132   :  { %v296_v41 = vmax.f32 %v291_v37, 0.0  ;;  %v91_v38 = vadd.f32 %v90_v35, %v89_v30 }
 0x134   :  { %330 = vmatpush.msra.mxu1 %v296_v41  ;;  %v92_v41 = vrot.slane %v91_v38, 1 }
 0x136   :  { %331 = vmatpush.msra.mxu1 %v295_v44 }
 0x138   :  { %332 = vmatpush.msra.mxu1 %v294_v45  ;;  %v93_v45 = vadd.f32 %v92_v41, %v91_v38 }
 0x13a   :  { %333 = vmatpush.msra.mxu1 %v293_v46 }
 0x13b   :  { %418 = vmatmul.msk.f32.vlgmr.msra.gmra.mxu1 %vm311_vm2, %v297_v47 }
 0x143   :  { %419 = vmatmul.msk.f32.gmra.mxu1 %vm311_vm2, %v298_v48 }
 0x1b8   :  { %v335_v58 = vpop.f32.mrf.mxu1 }
 0x1b9   :  { %v336_v59 = vadd.f32 %v335_v58, %v304_v55  ;;  %v401_v58 = vlaneseq }
 0x1bb   :  { %v352_v62 = vsel %vm86_vm3, %v336_v59, -inf  ;;  %v345_v15 = vsub.f32 %v344_v11, %v336_v59  ;;  %v402_v0 = vand.u32 127, %v401_v58 }
 0x1bc   :  { %v353_v63 = vrot.slane %v352_v62, 4 }
 0x1bd   :  { %vm405_vm5 = vcmp.lt.s32.totalorder %v402_v0, 8 }
 0x1be   :  { %v354_v1 = vmax.f32 %v352_v62, %v353_v63 }
 0x1c0   :  { %v355_v2 = vrot.slane %v354_v1, 2  ;;  %v338_v3 = vpop.f32.mrf.mxu1 }
 0x1c1   :  { %v339_v4 = vadd.f32 %v338_v3, %v309_v49 }
 0x1c2   :  { %v356_v6 = vmax.f32 %v354_v1, %v355_v2 }
 0x1c3   :  { %v341_v51 = vsub.f32 0.0, %v339_v4  ;;  %v346_v16 = vsub.f32 %v344_v11, %v339_v4  ;;  %v361_v50 = vrot.slane %v339_v4, 2 }
 0x1c4   :  { %v357_v7 = vrot.slane %v356_v6, 1 }
 0x1c5   :  { %v342_v8 = vmul.f32 1.442695, %v341_v51 }
 0x1c6   :  { %v358_v9 = vmax.f32 %v356_v6, %v357_v7 }
 0x1c7   :  { %449 = vpow2.f32 %v342_v8 }
 0x1c8   :  { %v359_v10 = vsub.f32 %v336_v59, %v358_v9 }
 0x1ca   :  { %v385_v12 = vmul.f32 1.442695, %v359_v10  ;;  %v363_v32 = vsub.f32 %v359_v10, %v361_v50 }
 0x1cc   :  { %451 = vpow2.f32 %v385_v12 }
 0x1cd   :  { %v450_v14 = vpop.eup %449 }
 0x1ce   :  { %v348_v17 = vrot.slane %v450_v14, 5 }
 0x1d0   :  { %v350_v19 = vmul.f32 %v348_v17, %v345_v15  ;;  %v351_v20 = vmul.f32 %v348_v17, %v346_v16 }
 0x1d2   :  { %v452_v21 = vpop.eup %451  ;;  %v364_v22 = vmul.f32 0.5, %v350_v19  ;;  %v365_v23 = vmul.f32 0.5, %v351_v20 }
 0x1d3   :  { %v387_v25 = vsel %vm86_vm3, %v452_v21, 0.0 }
 0x1d4   :  { %v366_v26 = vmul.f32 %v364_v22, %v350_v19  ;;  %v367_v27 = vmul.f32 %v365_v23, %v351_v20  ;;  %v388_v31 = vrot.slane %v387_v25, 4 }
 0x1d6   :  { %v371_v28 = vrot.slane %v366_v26, 5  ;;  %v372_v29 = vrot.slane %v367_v27, 5  ;;  %v389_v36 = vadd.f32 %v388_v31, %v387_v25 }
 0x1d8   :  { %v373_v33 = vsel %vm370_vm4, %v371_v28, %v372_v29  ;;  %v390_v39 = vrot.slane %v389_v36, 2 }
 0x1d9   :  { %v375_v34 = vsub.f32 %v363_v32, %v373_v33 }
 0x1da   :  { %v391_v42 = vadd.f32 %v390_v39, %v389_v36 }
 0x1db   :  { %v376_v37 = vmul.f32 1.442695, %v375_v34 }
 0x1dc   :  { %v392_v46 = vrot.slane %v391_v42, 1 }
 0x1dd   :  { %453 = vpow2.f32 %v376_v37 }
 0x1de   :  { %455 = vlog2.f32 %v93_v45  ;;  %v393_v49 = vadd.f32 %v392_v46, %v391_v42 }
 0x1e0   :  { %457 = vlog2.f32 %v393_v49 }
 0x1e3   :  { %v454_v40 = vpop.eup %453 }
 0x1e4   :  { %v378_v43 = vsel %vm86_vm3, %v454_v40, 0.0  ;;  %v456_v55 = vpop.eup %455 }
 0x1e5   :  { %v379_v44 = vrot.slane %v378_v43, 4  ;;  %v95_v56 = vmul.f32 0.6931472, %v456_v55 }
 0x1e6   :  { %v458_v57 = vpop.eup %457 }
 0x1e7   :  { %v380_v47 = vadd.f32 %v379_v44, %v378_v43  ;;  %v101_v61 = vsub.f32 %v95_v56, %v99_v60  ;;  %v397_v62 = vmul.f32 0.6931472, %v458_v57 }
 0x1e9   :  { %v381_v48 = vrot.slane %v380_v47, 2  ;;  %v413_v2 = vadd.f32 -0.9189385, %v101_v61 }
 0x1eb   :  { %v382_v52 = vadd.f32 %v381_v48, %v380_v47 }
 0x1ed   :  { %v383_v53 = vrot.slane %v382_v52, 1 }
 0x1ef   :  { %v384_v54 = vadd.f32 %v383_v53, %v382_v52 }
 0x1f1   :  { %459 = vlog2.f32 %v384_v54 }
 0x1f7   :  { %v460_v59 = vpop.eup %459 }
 0x1f8   :  { %v395_v63 = vmul.f32 0.6931472, %v460_v59 }
 0x1fa   :  { %v398_v1 = vsub.f32 %v395_v63, %v397_v62 }
 0x1fc   :  { %v420_v3 = vadd.f32 -0.9189385, %v398_v1 }
 0x1fe   :  { %v406_v4 = vadd.f32 %v420_v3, %v413_v2 }
 0x200   :  { %v407_v5 = vsel %vm405_vm5, %v406_v4, 0.0 }
 0x201   :  { %408 = vst [vmem:[%s647_s10] sm:$0x1] %v407_v5 }

</bundles_post_ra>
